<compile_context>
chip_gen: v7x
topology: tpu7x:2x2x1
jax: 0.10.0
libtpu: 0.0.40
codegen_flags: <defaults>
</compile_context>

<pallas_src>
import functools

import jax
import jax.numpy as jnp
from jax.experimental import pallas as pl
from jax.experimental.pallas import tpu as pltpu


def _round_up(x, m):
    return (x + m - 1) // m * m


def _conv_bn_relu_kernel(a_ref, b_ref, scale_ref, bias_ref, o_ref, acc_ref, *,
                         apply_relu):
    """One (tm, tn) output tile, accumulating over the K (reduction) grid axis.

    a_ref:     (tm, tk)  im2col patches
    b_ref:     (tk, tn)  reshaped conv weight
    scale_ref: (1, tn)   folded BN scale  (ones if bn disabled)
    bias_ref:  (1, tn)   folded BN bias   (zeros if bn disabled)
    acc_ref:   (tm, tn)  f32 VMEM accumulator scratch
    """
    k = pl.program_id(2)

    @pl.when(k == 0)
    def _():
        acc_ref[...] = jnp.zeros_like(acc_ref)

    acc_ref[...] += jnp.dot(a_ref[...], b_ref[...],
                            preferred_element_type=jnp.float32)

    @pl.when(k == pl.num_programs(2) - 1)
    def _():
        out = acc_ref[...] * scale_ref[...] + bias_ref[...]
        if apply_relu:
            out = jnp.maximum(out, 0.0)
        o_ref[...] = out.astype(o_ref.dtype)


def basic_conv2d(x, weight, *, stride=1, padding=0, dilation=1,
                 bn_params=None, relu=False,
                 tm=256, tn=128, max_tk=512):
    """Forward of BasicConv2d.

    x:        (N, C_in, H, W)          float32 / bfloat16
    weight:   (C_out, C_in, KH, KW)    conv weight, bias-free
    bn_params: None or (gamma, beta, running_mean, running_var, eps)
    relu:     apply ReLU after (optional) BN
    Returns   (N, C_out, H_out, W_out)
    """
    N, C_in, H, W = x.shape
    C_out, C_in_w, KH, KW = weight.shape
    assert C_in == C_in_w, (C_in, C_in_w)
    s, p, d = stride, padding, dilation

    H_out = (H + 2 * p - d * (KH - 1) - 1) // s + 1
    W_out = (W + 2 * p - d * (KW - 1) - 1) // s + 1

    # -------- im2col (pure data movement, done in JAX) --------------------
    # K ordering is (C_in, KH, KW) to match weight.reshape(C_out, -1).
    x_pad = jnp.pad(x, ((0, 0), (0, 0), (p, p), (p, p)))
    cols = []
    for kh in range(KH):
        for kw in range(KW):
            h0, w0 = kh * d, kw * d
            cols.append(x_pad[:, :,
                              h0:h0 + (H_out - 1) * s + 1:s,
                              w0:w0 + (W_out - 1) * s + 1:s])
    patches = jnp.stack(cols, axis=2)                 # (N, C_in, KH*KW, Ho, Wo)
    patches = patches.transpose(0, 3, 4, 1, 2)        # (N, Ho, Wo, C_in, KH*KW)
    patches = patches.reshape(N * H_out * W_out, C_in * KH * KW)

    w2d = weight.reshape(C_out, C_in * KH * KW).T     # (K, C_out)

    # -------- fold BatchNorm (inference) into per-channel affine ----------
    if bn_params is not None:
        gamma, beta, mean, var, eps = bn_params
        scale = (gamma / jnp.sqrt(var + eps)).astype(jnp.float32)
        bias = (beta - mean * scale).astype(jnp.float32)
    else:
        scale = jnp.ones((C_out,), jnp.float32)
        bias = jnp.zeros((C_out,), jnp.float32)

    # -------- pad to TPU-friendly tiles ------------------------------------
    M, K = patches.shape
    M_pad = _round_up(M, tm)
    N_pad = _round_up(C_out, tn)                      # lane-dense output
    if K > max_tk:
        tk = max_tk
        K_pad = _round_up(K, tk)
    else:
        K_pad = _round_up(K, 128)
        tk = K_pad

    a = jnp.pad(patches, ((0, M_pad - M), (0, K_pad - K)))
    b = jnp.pad(w2d, ((0, K_pad - K), (0, N_pad - C_out)))
    scale_p = jnp.pad(scale[None, :], ((0, 0), (0, N_pad - C_out)))
    bias_p = jnp.pad(bias[None, :], ((0, 0), (0, N_pad - C_out)))

    grid = (M_pad // tm, N_pad // tn, K_pad // tk)

    out = pl.pallas_call(
        functools.partial(_conv_bn_relu_kernel, apply_relu=relu),
        out_shape=jax.ShapeDtypeStruct((M_pad, N_pad), x.dtype),
        grid_spec=pltpu.PrefetchScalarGridSpec(
            num_scalar_prefetch=0,
            grid=grid,
            in_specs=[
                pl.BlockSpec((tm, tk), lambda i, j, k: (i, k)),   # patches
                pl.BlockSpec((tk, tn), lambda i, j, k: (k, j)),   # weight
                pl.BlockSpec((1, tn), lambda i, j, k: (0, j)),    # bn scale
                pl.BlockSpec((1, tn), lambda i, j, k: (0, j)),    # bn bias
            ],
            out_specs=pl.BlockSpec((tm, tn), lambda i, j, k: (i, j)),
            scratch_shapes=[pltpu.VMEM((tm, tn), jnp.float32)],
        ),
        compiler_params=pltpu.CompilerParams(
            dimension_semantics=("parallel", "parallel", "arbitrary")),
    )(a, b, scale_p, bias_p)

    out = out[:M, :C_out].reshape(N, H_out, W_out, C_out)
    return out.transpose(0, 3, 1, 2)                  # back to NCHW


def basic_conv2d_ref(x, weight, *, stride=1, padding=0, dilation=1,
                     bn_params=None, relu=False):
    """Pure-JAX reference for validation."""
    out = jax.lax.conv_general_dilated(
        x, weight,
        window_strides=(stride, stride),
        padding=[(padding, padding), (padding, padding)],
        rhs_dilation=(dilation, dilation),
        dimension_numbers=("NCHW", "OIHW", "NCHW"),
        precision=jax.lax.Precision.HIGHEST)
    if bn_params is not None:
        gamma, beta, mean, var, eps = bn_params
        scale = gamma / jnp.sqrt(var + eps)
        bias = beta - mean * scale
        out = out * scale[None, :, None, None] + bias[None, :, None, None]
    if relu:
        out = jnp.maximum(out, 0.0)
    return out


if __name__ == "__main__":
    key = jax.random.PRNGKey(0)
    N, C_in, C_out, H, W = 2, 4, 8, 16, 16
    KH = KW = 3
    stride, padding, dilation = 1, 1, 1
    eps = 1e-5

    kx, kw_, kg, kb, km, kv = jax.random.split(key, 6)
    x = jax.random.normal(kx, (N, C_in, H, W), dtype=jnp.float32)
    # nn.Conv2d(C_in, C_out, 3, padding=1, bias=False).weight -> (C_out, C_in, 3, 3)
    weight = jax.random.normal(kw_, (C_out, C_in, KH, KW), dtype=jnp.float32) * 0.1
    # BatchNorm2d(C_out) inference-mode parameters / running stats.
    gamma = 1.0 + 0.1 * jax.random.normal(kg, (C_out,), dtype=jnp.float32)
    beta = 0.1 * jax.random.normal(kb, (C_out,), dtype=jnp.float32)
    running_mean = 0.1 * jax.random.normal(km, (C_out,), dtype=jnp.float32)
    running_var = jax.nn.softplus(
        jax.random.normal(kv, (C_out,), dtype=jnp.float32)) + 0.5
    bn_params = (gamma, beta, running_mean, running_var, eps)

    # Default BasicConv2d config: bn=True, relu=False
    out = basic_conv2d(x, weight, stride=stride, padding=padding,
                       dilation=dilation, bn_params=bn_params, relu=False)
    out = jax.block_until_ready(out)
    ref = basic_conv2d_ref(x, weight, stride=stride, padding=padding,
                           dilation=dilation, bn_params=bn_params, relu=False)
    assert out.shape == (N, C_out, H, W), out.shape
    assert jnp.allclose(out, ref, atol=5e-3, rtol=5e-3), \
        float(jnp.max(jnp.abs(out - ref)))

    # relu=True variant (also used by the network)
    out_r = basic_conv2d(x, weight, stride=stride, padding=padding,
                         dilation=dilation, bn_params=bn_params, relu=True)
    out_r = jax.block_until_ready(out_r)
    ref_r = basic_conv2d_ref(x, weight, stride=stride, padding=padding,
                             dilation=dilation, bn_params=bn_params, relu=True)
    assert jnp.allclose(out_r, ref_r, atol=5e-3, rtol=5e-3), \
        float(jnp.max(jnp.abs(out_r - ref_r)))

    print("KERNEL_OK")
</pallas_src>

<mosaic_0001>
module attributes {stable_mosaic.version = 11 : i64} {
  func.func @_conv_bn_relu_kernel(%arg0: i32, %arg1: i32, %arg2: i32, %arg3: memref<256x128xf32, #tpu.memory_space<vmem>>, %arg4: memref<128x128xf32, #tpu.memory_space<vmem>>, %arg5: memref<1x128xf32, #tpu.memory_space<vmem>>, %arg6: memref<1x128xf32, #tpu.memory_space<vmem>>, %arg7: memref<256x128xf32, #tpu.memory_space<vmem>>, %arg8: memref<256x128xf32, #tpu.memory_space<vmem>>) attributes {dimension_semantics = [#tpu.dimension_semantics<parallel>, #tpu.dimension_semantics<parallel>, #tpu.dimension_semantics<arbitrary>], iteration_bounds = array<i64: 2, 1, 1>, scalar_prefetch = 0 : i64, scratch_operands = 1 : i64, tpu.core_type = #tpu.core_type<tc>, window_params = [{transform_indices = @transform_0, window_bounds = array<i64: 256, 128>}, {transform_indices = @transform_1, window_bounds = array<i64: 128, 128>}, {transform_indices = @transform_2, window_bounds = array<i64: 1, 128>}, {transform_indices = @transform_3, window_bounds = array<i64: 1, 128>}, {transform_indices = @transform_4, window_bounds = array<i64: 256, 128>}]} {
    %c0_i32 = arith.constant 0 : i32
    %0 = arith.cmpi eq, %arg2, %c0_i32 : i32
    %1 = arith.extui %0 : i1 to i32
    %c0_i32_0 = arith.constant 0 : i32
    %2 = arith.cmpi ne, %1, %c0_i32_0 : i32
    scf.if %2 {
      %cst_10 = arith.constant 0.000000e+00 : f32
      %12 = vector.broadcast %cst_10 : f32 to vector<256x128xf32>
      %c0_11 = arith.constant 0 : index
      %c0_12 = arith.constant 0 : index
      %13 = vector.load %arg8[%c0_11, %c0_12] : memref<256x128xf32, #tpu.memory_space<vmem>>, vector<256x128xf32>
      tpu.vector_store %arg8[%c0_11, %c0_12], %12 {strides = array<i32>} : memref<256x128xf32, #tpu.memory_space<vmem>>, vector<256x128xf32>,
    } else {
    }
    %c0 = arith.constant 0 : index
    %c0_1 = arith.constant 0 : index
    %3 = vector.load %arg8[%c0, %c0_1] : memref<256x128xf32, #tpu.memory_space<vmem>>, vector<256x128xf32>
    %c0_2 = arith.constant 0 : index
    %c0_3 = arith.constant 0 : index
    %4 = vector.load %arg3[%c0_2, %c0_3] : memref<256x128xf32, #tpu.memory_space<vmem>>, vector<256x128xf32>
    %c0_4 = arith.constant 0 : index
    %c0_5 = arith.constant 0 : index
    %5 = vector.load %arg4[%c0_4, %c0_5] : memref<128x128xf32, #tpu.memory_space<vmem>>, vector<128x128xf32>
    %cst = arith.constant dense<0.000000e+00> : vector<256x128xf32>
    %6 = tpu.matmul %4, %5, %cst {dimension_numbers = #tpu.dot_dimension_numbers<[1], [0], [0], [1], [0, 0, 1, 1], [], []>} : vector<256x128xf32>, vector<128x128xf32>, vector<256x128xf32> -> vector<256x128xf32>
    %7 = arith.addf %3, %6 : vector<256x128xf32>
    %c0_6 = arith.constant 0 : index
    %c0_7 = arith.constant 0 : index
    %8 = vector.load %arg8[%c0_6, %c0_7] : memref<256x128xf32, #tpu.memory_space<vmem>>, vector<256x128xf32>
    tpu.vector_store %arg8[%c0_6, %c0_7], %7 {strides = array<i32>} : memref<256x128xf32, #tpu.memory_space<vmem>>, vector<256x128xf32>,
    %c0_i32_8 = arith.constant 0 : i32
    %9 = arith.cmpi eq, %arg2, %c0_i32_8 : i32
    %10 = arith.extui %9 : i1 to i32
    %c0_i32_9 = arith.constant 0 : i32
    %11 = arith.cmpi ne, %10, %c0_i32_9 : i32
    scf.if %11 {
      %c0_10 = arith.constant 0 : index
      %c0_11 = arith.constant 0 : index
      %12 = vector.load %arg8[%c0_10, %c0_11] : memref<256x128xf32, #tpu.memory_space<vmem>>, vector<256x128xf32>
      %c0_12 = arith.constant 0 : index
      %c0_13 = arith.constant 0 : index
      %13 = vector.load %arg5[%c0_12, %c0_13] : memref<1x128xf32, #tpu.memory_space<vmem>>, vector<1x128xf32>
      %14 = vector.broadcast %13 : vector<1x128xf32> to vector<256x128xf32>
      %15 = arith.mulf %12, %14 : vector<256x128xf32>
      %c0_14 = arith.constant 0 : index
      %c0_15 = arith.constant 0 : index
      %16 = vector.load %arg6[%c0_14, %c0_15] : memref<1x128xf32, #tpu.memory_space<vmem>>, vector<1x128xf32>
      %17 = vector.broadcast %16 : vector<1x128xf32> to vector<256x128xf32>
      %18 = arith.addf %15, %17 : vector<256x128xf32>
      %c0_16 = arith.constant 0 : index
      %c0_17 = arith.constant 0 : index
      %19 = vector.load %arg7[%c0_16, %c0_17] : memref<256x128xf32, #tpu.memory_space<vmem>>, vector<256x128xf32>
      tpu.vector_store %arg7[%c0_16, %c0_17], %18 {strides = array<i32>} : memref<256x128xf32, #tpu.memory_space<vmem>>, vector<256x128xf32>,
    } else {
    }
    return
  }
  func.func @transform_0(%arg0: i32, %arg1: i32, %arg2: i32) -> (i32, i32) {
    %c0_i32 = arith.constant 0 : i32
    return %arg0, %arg2 : i32, i32
  }
  func.func @transform_1(%arg0: i32, %arg1: i32, %arg2: i32) -> (i32, i32) {
    %c0_i32 = arith.constant 0 : i32
    return %arg2, %arg1 : i32, i32
  }
  func.func @transform_2(%arg0: i32, %arg1: i32, %arg2: i32) -> (i32, i32) {
    %c0_i32 = arith.constant 0 : i32
    %c0_i32_0 = arith.constant 0 : i32
    return %c0_i32, %arg1 : i32, i32
  }
  func.func @transform_3(%arg0: i32, %arg1: i32, %arg2: i32) -> (i32, i32) {
    %c0_i32 = arith.constant 0 : i32
    %c0_i32_0 = arith.constant 0 : i32
    return %c0_i32, %arg1 : i32, i32
  }
  func.func @transform_4(%arg0: i32, %arg1: i32, %arg2: i32) -> (i32, i32) {
    %c0_i32 = arith.constant 0 : i32
    return %arg0, %arg1 : i32, i32
  }
}

</mosaic_0001>

<bundles_post_ra>
// kernel: tpu_custom_call.1
= control target key start
LH: loop header
LB: loop body
LE: loop exit
PB: predicated region body
PF: predicated region fallthrough
CT: control target
= control target key end

     0   :  { %9 = vsyncpa [#allocation4], 0  ;;  %s1814_s0 = inlined_call_operand.hbm [shape: f32[512,128], index: 0, kind: input, shape index: {}]   ;;  %s1815_s1 = inlined_call_operand.hbm [shape: f32[128,128], index: 1, kind: input, shape index: {}]   ;;  %s1816_s2 = inlined_call_operand.vmem [shape: f32[1,128], index: 2, kind: input, shape index: {}]   ;;  %s1817_s3 = inlined_call_operand.vmem [shape: f32[1,128], index: 3, kind: input, shape index: {}]   ;;  %s1818_s4 = inlined_call_operand.hbm [shape: f32[512,128], index: 4, kind: output, shape index: {}]  }
   0x1   :  { %11 = vsyncpa [#allocation4 + $0x1], 0 }
   0x2   :  { %12 = vsyncpa [#allocation7], 0 }
   0x3   :  { %13 = vsyncpa [#allocation5], 0 }
   0x4   :  { %15 = vsyncpa [#allocation5 + $0x1], 0  ;;  %s1442_s15 = smov 0   ;;  %s1444_s16 = smov 0  }
   0x5   :  { %s1446_s17 = smov 0   ;;  %s1448_s18 = smov 0  }
   0x6   :  { %s1450_s19 = smov 0   ;;  %s1452_s20 = smov 0  }
   0x7 LB: > { %s988_s21 = sadd.s32 4294967295, %s1408_s20   ;;  %s989_s22 = sadd.s32 4294967294, %s1408_s20   ;;  %s1408_s20 = sphi %s1452_s20, %s21_s20   ;;  %s1404_s19 = sphi %s1450_s19, %s1842_s19   ;;  %s1400_s18 = sphi %s1448_s18, %s1841_s18   ;;  %s1396_s17 = sphi %s1446_s17, %s1840_s17   ;;  %s1392_s16 = sphi %s1444_s16, %s1839_s16   ;;  %s1388_s15 = sphi %s1442_s15, %s1838_s15  }
   0x8   : > { %p62_p0 = scmp.ne.s32.totalorder %s1392_s16, %s1388_s15  ;;  %p1476_p1 = scmp.eq.s32.totalorder %s988_s21, 0 }
   0x9   : > { %p1480_p2 = scmp.eq.s32.totalorder %s988_s21, 1  ;;  %p174_p3 = scmp.eq.s32.totalorder %s989_s22, 1 }
   0xa   : > { %s1823_s23 = scalar_select %p1476_p1, 1, 0 }
   0xb   : > { %s1824_s24 = scalar_select %p1480_p2, 1, 0 }
   0xc   : > { %p1486_p4 = por %p1476_p1, %p62_p0  ;;  %p990_p5 = scmp.ge.s32.totalorder %s1408_s20, 1 }
   0xd   : > { %p1491_p6 = por %p174_p3, %p62_p0  ;;  %p181_p7 = scmp.lt.s32.totalorder %s1408_s20, 3 }
   0xe   : > { %s1825_s25 = scalar_select %p1486_p4, 1, 0 }
   0xf   : > { %s1826_s26 = scalar_select %p1491_p6, 1, 0 }
  0x10   : > { %p1496_p8 = pnand %p990_p5, %p181_p7  ;;  %s1410_s28 = smov [#allocation6]  }
  0x11   : > { %s197_s29 = sshll.u32 %s1410_s28, 4  ;;  %s40_s5 = sadd.s32 1, %s1404_s19  ;;  %s198_s29 = int_to_ptr.vmem [resolvable:$true] %s197_s29 }
  0x12   : > { %s1827_s27 = scalar_select %p1496_p8, 1, 0 }
  0x13   : > { %p1195_p9 = pneg %p1496_p8  ;;  %s1264_s8 = scalar_lea.hbm %s1815_s1, 2048 }
  0x14   : > { %p1265_p12 = scmp.ne.s32.totalorder %s1815_s1, %s1264_s8  ;;  %p1271_p5 = scmp.lt.u32.totalorder %s1264_s8, %s1815_s1 }
  0x15   : > { %p1505_p11 = pnand %p1195_p9, %p1476_p1 }
  0x17   : > { %p1266_p13 = pneg %p1505_p11 }
  0x19   : > { %p1267_p0 = pnand %p1266_p13, %p1265_p12 }
  0x1b   : > { %p1268_p3 = pneg %p1267_p0 }
  0x1d   : > { %p1273_p7 = pnand %p1271_p5, %p1268_p3 }
  0x1f   : > { %1276 = shalt.err (!%p1273_p7)
}
  0x20   : > { %s1277_s13 = scalar_lea.vmem %s198_s29, 2048  ;;  %p1285_p1 = scmp.lt.s32.totalorder %s198_s29, %s198_s29 }
  0x21   : > { %p1278_p9 = scmp.ne.s32.totalorder %s198_s29, %s1277_s13  ;;  %p1286_p4 = scmp.lt.s32.totalorder %s1277_s13, %s1277_s13 }
  0x23   : > { %p1280_p10 = pnand %p1278_p9, %p1266_p13  ;;  %p1287_p8 = por %p1286_p4, %p1285_p1 }
  0x25   : > { %p1281_p6 = pneg %p1280_p10 }
  0x27   : > { %p1288_p2 = pnand %p1287_p8, %p1281_p6 }
  0x29   : > { %1291 = shalt.err (!%p1288_p2)
}
  0x2a   : > { %s1411_s14 = smov 128   ;;  %s1412_s21 = smov 8  }
  0x2b   : > { %1198 = dma.hbm_to_vmem [thread:$0]  (!%p1505_p11), %s1815_s1, 2048, %s198_s29, [#allocation7], %s1411_s14, %s1411_s14, %s1412_s21  }
  0x2c   : > { %p42_p1 = scmp.ge.s32.totalorder %s40_s5, 2  ;;  %s49_s6 = sadd.s32 1, %s1396_s17 }
  0x2d   : > { %p56_p2 = scmp.ne.s32.totalorder %s1396_s17, %s1392_s16  ;;  %p57_p4 = scmp.eq.s32.totalorder %s1408_s20, 0 }
  0x2e   : > { %s1844_s5 = smov (%p42_p1, %s40_s5), 0  ;;  %p1830_p8 = scmp.ne.s32.totalorder %s1824_s24, 0 }
  0x2f   : > { %p1535_p6 = por %p57_p4, %p56_p2  ;;  %s44_s8 = ssub.s32 %s1404_s19, %s1844_s5 }
  0x30   : > { %p1541_p10 = por %p1830_p8, %p56_p2  ;;  %p1208_p12 = scmp.lt.s32.totalorder %s1408_s20, 2 }
  0x31   : > { %p47_p11 = scmp.eq.s32.totalorder %s44_s8, 0  ;;  %s223_s29 = sand.u32 1, %s1396_s17  }
  0x32   : > { %s995_s9 = sshll.u32 %s223_s29, 8  ;;  %s1009_s11 = sshll.u32 %s1404_s19, 12 }
  0x33   : > { %s1550_s10 = scalar_select %p47_p11, %s1396_s17, %s49_s6  }
  0x34   : > { %s1556_s22 = scalar_lea.hbm %s1814_s0, %s1009_s11  ;;  %s227_s24 = scalar_lea.vmem [#allocation3], %s995_s9 }
  0x35   : > { %s235_s28 = sshll.u32 %s227_s24, 4  ;;  %p1562_p13 = pnand %p1208_p12, %p1535_p6  ;;  %s1558_s28 = int_to_ptr.vmem [resolvable:$true] %s235_s28 }
  0x36   : > { %s1566_s6 = scalar_lea.sflag [#allocation4], %s223_s29  ;;  %s1292_s12 = scalar_lea.hbm %s1556_s22, 4096 }
  0x37   : > { %p1293_p0 = scmp.ne.s32.totalorder %s1556_s22, %s1292_s12  ;;  %p1294_p3 = pneg %p1562_p13 }
  0x38   : > { %s1297_s7 = scalar_lea.hbm %s1814_s0, 8192  ;;  %p1298_p9 = scmp.lt.u32.totalorder %s1556_s22, %s1814_s0 }
  0x39   : > { %p1295_p5 = pnand %p1294_p3, %p1293_p0  ;;  %p1299_p1 = scmp.lt.u32.totalorder %s1297_s7, %s1292_s12 }
  0x3a   : > { %p1301_p4 = scmp.lt.u32.totalorder %s1292_s12, %s1556_s22 }
  0x3b   : > { %p1296_p7 = pneg %p1295_p5  ;;  %p1300_p2 = por %p1299_p1, %p1298_p9 }
  0x3d   : > { %p1302_p6 = por %p1301_p4, %p1300_p2 }
  0x3f   : > { %p1303_p8 = pnand %p1302_p6, %p1296_p7 }
  0x41   : > { %1306 = shalt.err (!%p1303_p8)
}
  0x42   : > { %s1307_s29 = scalar_lea.vmem %s1558_s28, 4096  ;;  %s1413_s9 = smov [#allocation3]  }
  0x43   : > { %p1308_p12 = scmp.ne.s32.totalorder %s1558_s28, %s1307_s29  ;;  %s1312_s11 = sshll.u32 %s1413_s9, 4  ;;  %s1313_s11 = int_to_ptr.vmem [resolvable:$false] %s1312_s11 }
  0x44   : > { %s1314_s13 = scalar_lea.vmem %s1313_s11, 8192  ;;  %p1315_p5 = scmp.lt.s32.totalorder %s1558_s28, %s1313_s11 }
  0x45   : > { %p1310_p11 = pnand %p1308_p12, %p1294_p3  ;;  %p1316_p9 = scmp.lt.s32.totalorder %s1314_s13, %s1307_s29 }
  0x47   : > { %p1311_p0 = pneg %p1310_p11  ;;  %p1317_p1 = por %p1316_p9, %p1315_p5 }
  0x49   : > { %p1318_p2 = pnand %p1317_p1, %p1311_p0 }
  0x4b   : > { %1321 = shalt.err (!%p1318_p2)
}
  0x4c   : > { %1202 = dma.hbm_to_vmem [thread:$0]  (!%p1562_p13), %s1556_s22, 4096, %s1558_s28, %s1566_s6, %s1411_s14, %s1411_s14, %s1412_s21  }
  0x4d   : > { %p1833_p3 = scmp.ne.s32.totalorder %s1827_s27, 0 }
  0x4e   : > { %s1600_s12 = sand.u32 (!%p1833_p3), 1, %s1392_s16   ;;  %p1834_p7 = scmp.ne.s32.totalorder (!%p1833_p3), %s1825_s25, 0 }
  0x4f   : > { %247 = sbr.rel (%p1833_p3) target bundleno = 385 (0x181), region = 36  ;;  %s999_s7 = sshll.u32 (!%p1833_p3), %s1600_s12, 8 }
  0x50   : > { %s250_s24 = scalar_lea.sflag (!%p1833_p3), [#allocation4], %s1600_s12  ;;  %s1606_s8 = scalar_lea.vmem (!%p1833_p3), [#allocation3], %s999_s7 }
  0x56   : > { %1375 = dma.done.wait (%p1834_p7), %s250_s24, 4096  }
  0x57   : > { %1377 = vsyncadd (%p1834_p7), %s250_s24, 4294963200  ;;  %p1835_p13 = scmp.ne.s32.totalorder %s1823_s23, 0 }
  0x59   : > { %1379 = dma.done.wait (%p1835_p13), [#allocation7], 2048  }
  0x5a   : > { %1381 = vsyncadd (%p1835_p13), [#allocation7], 4294965248  ;;  %v397_v0 = vld [vmem:[#allocation6] sm:$0xff]  ;;  %v398_v1 = vld [vmem:[#allocation6 + $0x8] sm:$0xff]  ;;  %s1668_s21 = scalar_lea.vmem [#allocation8], %s999_s7  ;;  %s1010_s22 = sshll.u32 %s1400_s18, 12 }
  0x5b   : > { %v399_v2 = vld [vmem:[#allocation6 + $0x10] sm:$0xff]  ;;  %v1139_v3 = vpack.c.bf16 %v398_v1, %v397_v0  ;;  %v400_v4 = vld [vmem:[#allocation6 + $0x18] sm:$0xff]  ;;  %v401_v6 = vld [vmem:[#allocation6 + $0x20] sm:$0xff]  ;;  %s862_s28 = sshll.u32 %s1668_s21, 4  ;;  %s1757_s29 = scalar_lea.hbm %s1818_s4, %s1010_s22  ;;  %s1759_s28 = int_to_ptr.vmem [resolvable:$true] %s862_s28 }
  0x5c   : > { %v1143_v5 = vpack.c.bf16 %v400_v4, %v399_v2  ;;  %v402_v7 = vld [vmem:[#allocation6 + $0x28] sm:$0xff]  ;;  %v365_v9 = vld [vmem:[%s1606_s8] sm:$0xff]  ;;  %v403_v11 = vld [vmem:[#allocation6 + $0x30] sm:$0xff]  ;;  %s848_s9 = scalar_lea.sflag [#allocation5], %s1600_s12  ;;  %s1322_s11 = scalar_lea.vmem %s1759_s28, 4096 }
  0x5d   : > { %1140 = vmatprep.subr.bf16.mxu0 %v1139_v3  ;;  %1171 = vmatprep.subr.bf16.mxu1 %v1139_v3  ;;  %v1147_v8 = vpack.c.bf16 %v402_v7, %v401_v6  ;;  %v381_v10 = vld [vmem:[%s1606_s8 + $0x80] sm:$0xff]  ;;  %v404_v12 = vld [vmem:[#allocation6 + $0x38] sm:$0xff]  ;;  %v406_v15 = vld [vmem:[#allocation6 + $0x48] sm:$0xff]  ;;  %p1323_p4 = scmp.ne.s32.totalorder %s1759_s28, %s1322_s11  ;;  %s1414_s13 = smov [#allocation8]  }
  0x5e   : > { %1142 = vmatpush3.bf16.msra.mxu0 %v1139_v3  ;;  %1179 = vmatpush3.bf16.msra.mxu1 %v1139_v3  ;;  %v1151_v13 = vpack.c.bf16 %v404_v12, %v403_v11  ;;  %v405_v14 = vld [vmem:[#allocation6 + $0x40] sm:$0xff]  ;;  %v407_v17 = vld [vmem:[#allocation6 + $0x50] sm:$0xff]  ;;  %v408_v18 = vld [vmem:[#allocation6 + $0x58] sm:$0xff]  ;;  %s1326_s7 = sshll.u32 %s1414_s13, 4  ;;  %s1327_s7 = int_to_ptr.vmem [resolvable:$false] %s1326_s7 }
  0x5f   : > { %1144 = vmatprep.subr.bf16.mxu0 %v1143_v5  ;;  %1172 = vmatprep.subr.bf16.mxu1 %v1143_v5  ;;  %v1155_v16 = vpack.c.bf16 %v406_v15, %v405_v14  ;;  %v1159_v19 = vpack.c.bf16 %v408_v18, %v407_v17  ;;  %v409_v20 = vld [vmem:[#allocation6 + $0x60] sm:$0xff]  ;;  %v410_v21 = vld [vmem:[#allocation6 + $0x68] sm:$0xff]  ;;  %v411_v23 = vld [vmem:[#allocation6 + $0x70] sm:$0xff]  ;;  %p1324_p6 = pnand %p1323_p4, %p1541_p10  ;;  %s1328_s24 = scalar_lea.vmem %s1327_s7, 8192 }
  0x60   : > { %1091 = vmatprep.mubr.f32.mxu0 %v365_v9  ;;  %1115 = vmatprep.mubr.f32.mxu1 %v381_v10  ;;  %v1163_v22 = vpack.c.bf16 %v410_v21, %v409_v20  ;;  %v412_v24 = vld [vmem:[#allocation6 + $0x78] sm:$0xff]  ;;  %v366_v26 = vld [vmem:[%s1606_s8 + $0x8] sm:$0xff]  ;;  %v367_v28 = vld [vmem:[%s1606_s8 + $0x10] sm:$0xff]  ;;  %p1329_p12 = scmp.lt.s32.totalorder %s1759_s28, %s1327_s7  ;;  %p1330_p11 = scmp.lt.s32.totalorder %s1328_s24, %s1322_s11 }
  0x61   : > { %v1167_v25 = vpack.c.bf16 %v412_v24, %v411_v23  ;;  %v382_v27 = vld [vmem:[%s1606_s8 + $0x88] sm:$0xff]  ;;  %v383_v29 = vld [vmem:[%s1606_s8 + $0x90] sm:$0xff]  ;;  %v368_v30 = vld [vmem:[%s1606_s8 + $0x18] sm:$0xff]  ;;  %p1325_p8 = pneg %p1324_p6 }
  0x62   : > { %1146 = vmatpush3.bf16.msra.mxu0 %v1143_v5  ;;  %1180 = vmatpush3.bf16.msra.mxu1 %v1143_v5  ;;  %v384_v31 = vld [vmem:[%s1606_s8 + $0x98] sm:$0xff]  ;;  %v369_v32 = vld [vmem:[%s1606_s8 + $0x20] sm:$0xff]  ;;  %v370_v34 = vld [vmem:[%s1606_s8 + $0x28] sm:$0xff]  ;;  %p1331_p0 = por %p1330_p11, %p1329_p12 }
  0x63   : > { %1148 = vmatprep.subr.bf16.mxu0 %v1147_v8  ;;  %1173 = vmatprep.subr.bf16.mxu1 %v1147_v8  ;;  %v385_v33 = vld [vmem:[%s1606_s8 + $0xa0] sm:$0xff]  ;;  %v386_v35 = vld [vmem:[%s1606_s8 + $0xa8] sm:$0xff]  ;;  %v371_v36 = vld [vmem:[%s1606_s8 + $0x30] sm:$0xff] }
  0x64   : > { %v387_v37 = vld [vmem:[%s1606_s8 + $0xb0] sm:$0xff]  ;;  %v372_v38 = vld [vmem:[%s1606_s8 + $0x38] sm:$0xff]  ;;  %v373_v40 = vld [vmem:[%s1606_s8 + $0x40] sm:$0xff]  ;;  %p1332_p5 = pnand %p1331_p0, %p1325_p8 }
  0x65   : > { %v388_v39 = vld [vmem:[%s1606_s8 + $0xb8] sm:$0xff]  ;;  %v389_v41 = vld [vmem:[%s1606_s8 + $0xc0] sm:$0xff]  ;;  %v374_v42 = vld [vmem:[%s1606_s8 + $0x48] sm:$0xff] }
  0x66   : > { %1150 = vmatpush3.bf16.msra.mxu0 %v1147_v8  ;;  %1181 = vmatpush3.bf16.msra.mxu1 %v1147_v8  ;;  %v390_v43 = vld [vmem:[%s1606_s8 + $0xc8] sm:$0xff]  ;;  %v375_v44 = vld [vmem:[%s1606_s8 + $0x50] sm:$0xff]  ;;  %v376_v46 = vld [vmem:[%s1606_s8 + $0x58] sm:$0xff] }
  0x67   : > { %1152 = vmatprep.subr.bf16.mxu0 %v1151_v13  ;;  %1174 = vmatprep.subr.bf16.mxu1 %v1151_v13  ;;  %v391_v45 = vld [vmem:[%s1606_s8 + $0xd0] sm:$0xff]  ;;  %v392_v47 = vld [vmem:[%s1606_s8 + $0xd8] sm:$0xff]  ;;  %v377_v48 = vld [vmem:[%s1606_s8 + $0x60] sm:$0xff] }
  0x68   : > { %v393_v49 = vld [vmem:[%s1606_s8 + $0xe0] sm:$0xff]  ;;  %v378_v50 = vld [vmem:[%s1606_s8 + $0x68] sm:$0xff]  ;;  %v379_v52 = vld [vmem:[%s1606_s8 + $0x70] sm:$0xff] }
  0x69   : > { %v394_v51 = vld [vmem:[%s1606_s8 + $0xe8] sm:$0xff]  ;;  %v395_v53 = vld [vmem:[%s1606_s8 + $0xf0] sm:$0xff]  ;;  %v380_v54 = vld [vmem:[%s1606_s8 + $0x78] sm:$0xff] }
  0x6a   : > { %1154 = vmatpush3.bf16.msra.mxu0 %v1151_v13  ;;  %1182 = vmatpush3.bf16.msra.mxu1 %v1151_v13  ;;  %v396_v55 = vld [vmem:[%s1606_s8 + $0xf8] sm:$0xff]  ;;  %v1651_v56 = vld [vmem:[%s1816_s2] ss:$0 sm:$0xff] }
  0x6b   : > { %1156 = vmatprep.subr.bf16.mxu0 %v1155_v16  ;;  %1175 = vmatprep.subr.bf16.mxu1 %v1155_v16  ;;  %v1656_v58 = vld [vmem:[%s1817_s3] ss:$0 sm:$0xff] }
  0x6e   : > { %1158 = vmatpush3.bf16.msra.mxu0 %v1155_v16  ;;  %1183 = vmatpush3.bf16.msra.mxu1 %v1155_v16 }
  0x6f   : > { %1160 = vmatprep.subr.bf16.mxu0 %v1159_v19  ;;  %1176 = vmatprep.subr.bf16.mxu1 %v1159_v19 }
  0x72   : > { %1162 = vmatpush3.bf16.msra.mxu0 %v1159_v19  ;;  %1184 = vmatpush3.bf16.msra.mxu1 %v1159_v19 }
  0x73   : > { %1164 = vmatprep.subr.bf16.mxu0 %v1163_v22  ;;  %1177 = vmatprep.subr.bf16.mxu1 %v1163_v22 }
  0x76   : > { %1166 = vmatpush3.bf16.msra.mxu0 %v1163_v22  ;;  %1185 = vmatpush3.bf16.msra.mxu1 %v1163_v22 }
  0x77   : > { %1168 = vmatprep.subr.bf16.mxu0 %v1167_v25  ;;  %1178 = vmatprep.subr.bf16.mxu1 %v1167_v25 }
  0x7a   : > { %1170 = vmatpush3.bf16.msra.mxu0 %v1167_v25  ;;  %1186 = vmatpush3.bf16.msra.mxu1 %v1167_v25 }
  0x7d   : > { %1092 = vmatmul.mubr.f32.vlgmr.msra.gmra.mrb[0].mxu0 %v366_v26  ;;  %1116 = vmatmul.mubr.f32.vlgmr.msra.gmra.mrb[0].mxu1 %v382_v27 }
  0x7e   : > { %1094 = vmatprep.mubr.f32.mxu0 %v367_v28  ;;  %1118 = vmatprep.mubr.f32.mxu1 %v383_v29 }
  0x81   : > { %1095 = vmatmul.mubr.f32.gmra.mrb[2].mxu0 %v368_v30  ;;  %1119 = vmatmul.mubr.f32.gmra.mrb[2].mxu1 %v384_v31 }
  0x82   : > { %1097 = vmatprep.mubr.f32.mxu0 %v369_v32  ;;  %1121 = vmatprep.mubr.f32.mxu1 %v385_v33 }
  0x85   : > { %1098 = vmatmul.mubr.f32.gmra.mrb[4].mxu0 %v370_v34  ;;  %1122 = vmatmul.mubr.f32.gmra.mrb[4].mxu1 %v386_v35 }
  0x86   : > { %1100 = vmatprep.mubr.f32.mxu0 %v371_v36  ;;  %1124 = vmatprep.mubr.f32.mxu1 %v387_v37 }
  0x89   : > { %1101 = vmatmul.mubr.f32.gmra.mrb[6].mxu0 %v372_v38  ;;  %1125 = vmatmul.mubr.f32.gmra.mrb[6].mxu1 %v388_v39 }
  0x8a   : > { %1103 = vmatprep.mubr.f32.mxu0 %v373_v40  ;;  %1127 = vmatprep.mubr.f32.mxu1 %v389_v41 }
  0x8d   : > { %1104 = vmatmul.mubr.f32.gmra.mrb[8].mxu0 %v374_v42  ;;  %1128 = vmatmul.mubr.f32.gmra.mrb[8].mxu1 %v390_v43 }
  0x8e   : > { %1106 = vmatprep.mubr.f32.mxu0 %v375_v44  ;;  %1130 = vmatprep.mubr.f32.mxu1 %v391_v45 }
  0x91   : > { %1107 = vmatmul.mubr.f32.gmra.mrb[10].mxu0 %v376_v46  ;;  %1131 = vmatmul.mubr.f32.gmra.mrb[10].mxu1 %v392_v47 }
  0x92   : > { %1109 = vmatprep.mubr.f32.mxu0 %v377_v48  ;;  %1133 = vmatprep.mubr.f32.mxu1 %v393_v49 }
  0x95   : > { %1110 = vmatmul.mubr.f32.gmra.mrb[12].mxu0 %v378_v50  ;;  %1134 = vmatmul.mubr.f32.gmra.mrb[12].mxu1 %v394_v51 }
  0x96   : > { %1112 = vmatprep.mubr.f32.mxu0 %v379_v52  ;;  %1136 = vmatprep.mubr.f32.mxu1 %v395_v53 }
  0x99   : > { %1113 = vmatmul.mubr.f32.gmra.mrb[14].mxu0 %v380_v54  ;;  %1137 = vmatmul.mubr.f32.gmra.mrb[14].mxu1 %v396_v55 }
 0x150   : > { %v1093_v57 = vpop.f32.mrb[0].mxu0  ;;  %v1117_v59 = vpop.f32.mrb[0].mxu1 }
 0x151   : > { %v745_v60 = vmul.f32 %v1093_v57, %v1651_v56  ;;  %v761_v61 = vmul.f32 %v1117_v59, %v1651_v56  ;;  %v479_v62 = vpop.f32.mrb[1].mxu0  ;;  %v559_v63 = vpop.f32.mrb[1].mxu1 }
 0x152   : > { %v744_v0 = vmul.f32 %v1651_v56, %v479_v62  ;;  %v760_v1 = vmul.f32 %v1651_v56, %v559_v63 }
 0x153   : > { %v784_v2 = vadd.f32 %v1656_v58, %v745_v60  ;;  %v800_v3 = vadd.f32 %v1656_v58, %v761_v61 }
 0x154   : > { %v783_v4 = vadd.f32 %v1656_v58, %v744_v0  ;;  %v799_v5 = vadd.f32 %v1656_v58, %v760_v1  ;;  %v1096_v6 = vpop.f32.mrb[2].mxu0  ;;  %v1120_v7 = vpop.f32.mrb[2].mxu1 }
 0x155   : > { %816 = vst [vmem:[%s1668_s21 + $0x8] sm:$0xff] %v784_v2  ;;  %832 = vst [vmem:[%s1668_s21 + $0x88] sm:$0xff] %v800_v3  ;;  %v747_v8 = vmul.f32 %v1096_v6, %v1651_v56  ;;  %v763_v9 = vmul.f32 %v1120_v7, %v1651_v56  ;;  %v489_v10 = vpop.f32.mrb[3].mxu0  ;;  %v569_v11 = vpop.f32.mrb[3].mxu1 }
 0x156   : > { %815 = vst [vmem:[%s1668_s21] sm:$0xff] %v783_v4  ;;  %831 = vst [vmem:[%s1668_s21 + $0x80] sm:$0xff] %v799_v5  ;;  %v746_v12 = vmul.f32 %v1651_v56, %v489_v10  ;;  %v762_v13 = vmul.f32 %v1651_v56, %v569_v11 }
 0x157   : > { %v786_v14 = vadd.f32 %v1656_v58, %v747_v8  ;;  %v802_v15 = vadd.f32 %v1656_v58, %v763_v9 }
 0x158   : > { %v785_v16 = vadd.f32 %v1656_v58, %v746_v12  ;;  %v801_v17 = vadd.f32 %v1656_v58, %v762_v13  ;;  %v1099_v18 = vpop.f32.mrb[4].mxu0  ;;  %v1123_v19 = vpop.f32.mrb[4].mxu1 }
 0x159   : > { %818 = vst [vmem:[%s1668_s21 + $0x18] sm:$0xff] %v786_v14  ;;  %834 = vst [vmem:[%s1668_s21 + $0x98] sm:$0xff] %v802_v15  ;;  %v749_v20 = vmul.f32 %v1099_v18, %v1651_v56  ;;  %v765_v21 = vmul.f32 %v1123_v19, %v1651_v56  ;;  %v499_v22 = vpop.f32.mrb[5].mxu0  ;;  %v579_v23 = vpop.f32.mrb[5].mxu1 }
 0x15a   : > { %817 = vst [vmem:[%s1668_s21 + $0x10] sm:$0xff] %v785_v16  ;;  %833 = vst [vmem:[%s1668_s21 + $0x90] sm:$0xff] %v801_v17  ;;  %v748_v24 = vmul.f32 %v1651_v56, %v499_v22  ;;  %v764_v25 = vmul.f32 %v1651_v56, %v579_v23 }
 0x15b   : > { %v788_v26 = vadd.f32 %v1656_v58, %v749_v20  ;;  %v804_v27 = vadd.f32 %v1656_v58, %v765_v21 }
 0x15c   : > { %v787_v28 = vadd.f32 %v1656_v58, %v748_v24  ;;  %v803_v29 = vadd.f32 %v1656_v58, %v764_v25  ;;  %v1102_v30 = vpop.f32.mrb[6].mxu0  ;;  %v1126_v31 = vpop.f32.mrb[6].mxu1 }
 0x15d   : > { %820 = vst [vmem:[%s1668_s21 + $0x28] sm:$0xff] %v788_v26  ;;  %836 = vst [vmem:[%s1668_s21 + $0xa8] sm:$0xff] %v804_v27  ;;  %v751_v32 = vmul.f32 %v1102_v30, %v1651_v56  ;;  %v767_v33 = vmul.f32 %v1126_v31, %v1651_v56  ;;  %v509_v34 = vpop.f32.mrb[7].mxu0  ;;  %v589_v35 = vpop.f32.mrb[7].mxu1 }
 0x15e   : > { %819 = vst [vmem:[%s1668_s21 + $0x20] sm:$0xff] %v787_v28  ;;  %835 = vst [vmem:[%s1668_s21 + $0xa0] sm:$0xff] %v803_v29  ;;  %v750_v36 = vmul.f32 %v1651_v56, %v509_v34  ;;  %v766_v37 = vmul.f32 %v1651_v56, %v589_v35 }
 0x15f   : > { %v790_v38 = vadd.f32 %v1656_v58, %v751_v32  ;;  %v806_v39 = vadd.f32 %v1656_v58, %v767_v33 }
 0x160   : > { %v789_v40 = vadd.f32 %v1656_v58, %v750_v36  ;;  %v805_v41 = vadd.f32 %v1656_v58, %v766_v37  ;;  %v1105_v42 = vpop.f32.mrb[8].mxu0  ;;  %v1129_v43 = vpop.f32.mrb[8].mxu1 }
 0x161   : > { %822 = vst [vmem:[%s1668_s21 + $0x38] sm:$0xff] %v790_v38  ;;  %838 = vst [vmem:[%s1668_s21 + $0xb8] sm:$0xff] %v806_v39  ;;  %v753_v44 = vmul.f32 %v1105_v42, %v1651_v56  ;;  %v769_v45 = vmul.f32 %v1129_v43, %v1651_v56  ;;  %v519_v46 = vpop.f32.mrb[9].mxu0  ;;  %v599_v47 = vpop.f32.mrb[9].mxu1 }
 0x162   : > { %821 = vst [vmem:[%s1668_s21 + $0x30] sm:$0xff] %v789_v40  ;;  %837 = vst [vmem:[%s1668_s21 + $0xb0] sm:$0xff] %v805_v41  ;;  %v752_v48 = vmul.f32 %v1651_v56, %v519_v46  ;;  %v768_v49 = vmul.f32 %v1651_v56, %v599_v47 }
 0x163   : > { %v792_v50 = vadd.f32 %v1656_v58, %v753_v44  ;;  %v808_v51 = vadd.f32 %v1656_v58, %v769_v45 }
 0x164   : > { %v791_v52 = vadd.f32 %v1656_v58, %v752_v48  ;;  %v807_v53 = vadd.f32 %v1656_v58, %v768_v49  ;;  %v1108_v54 = vpop.f32.mrb[10].mxu0  ;;  %v1132_v55 = vpop.f32.mrb[10].mxu1 }
 0x165   : > { %824 = vst [vmem:[%s1668_s21 + $0x48] sm:$0xff] %v792_v50  ;;  %840 = vst [vmem:[%s1668_s21 + $0xc8] sm:$0xff] %v808_v51  ;;  %v755_v57 = vmul.f32 %v1108_v54, %v1651_v56  ;;  %v771_v59 = vmul.f32 %v1132_v55, %v1651_v56  ;;  %v529_v60 = vpop.f32.mrb[11].mxu0  ;;  %v609_v61 = vpop.f32.mrb[11].mxu1 }
 0x166   : > { %823 = vst [vmem:[%s1668_s21 + $0x40] sm:$0xff] %v791_v52  ;;  %839 = vst [vmem:[%s1668_s21 + $0xc0] sm:$0xff] %v807_v53  ;;  %v754_v62 = vmul.f32 %v1651_v56, %v529_v60  ;;  %v770_v63 = vmul.f32 %v1651_v56, %v609_v61 }
 0x167   : > { %v794_v0 = vadd.f32 %v1656_v58, %v755_v57  ;;  %v810_v1 = vadd.f32 %v1656_v58, %v771_v59 }
 0x168   : > { %v793_v2 = vadd.f32 %v1656_v58, %v754_v62  ;;  %v809_v3 = vadd.f32 %v1656_v58, %v770_v63  ;;  %v1111_v4 = vpop.f32.mrb[12].mxu0  ;;  %v1135_v5 = vpop.f32.mrb[12].mxu1 }
 0x169   : > { %826 = vst [vmem:[%s1668_s21 + $0x58] sm:$0xff] %v794_v0  ;;  %842 = vst [vmem:[%s1668_s21 + $0xd8] sm:$0xff] %v810_v1  ;;  %v757_v6 = vmul.f32 %v1111_v4, %v1651_v56  ;;  %v773_v7 = vmul.f32 %v1135_v5, %v1651_v56  ;;  %v539_v8 = vpop.f32.mrb[13].mxu0  ;;  %v619_v9 = vpop.f32.mrb[13].mxu1 }
 0x16a   : > { %825 = vst [vmem:[%s1668_s21 + $0x50] sm:$0xff] %v793_v2  ;;  %841 = vst [vmem:[%s1668_s21 + $0xd0] sm:$0xff] %v809_v3  ;;  %v756_v10 = vmul.f32 %v1651_v56, %v539_v8  ;;  %v772_v11 = vmul.f32 %v1651_v56, %v619_v9 }
 0x16b   : > { %v796_v12 = vadd.f32 %v1656_v58, %v757_v6  ;;  %v812_v13 = vadd.f32 %v1656_v58, %v773_v7 }
 0x16c   : > { %v795_v14 = vadd.f32 %v1656_v58, %v756_v10  ;;  %v811_v15 = vadd.f32 %v1656_v58, %v772_v11  ;;  %v1114_v16 = vpop.f32.mrb[14].mxu0  ;;  %v1138_v17 = vpop.f32.mrb[14].mxu1 }
 0x16d   : > { %828 = vst [vmem:[%s1668_s21 + $0x68] sm:$0xff] %v796_v12  ;;  %844 = vst [vmem:[%s1668_s21 + $0xe8] sm:$0xff] %v812_v13  ;;  %v759_v18 = vmul.f32 %v1114_v16, %v1651_v56  ;;  %v775_v19 = vmul.f32 %v1138_v17, %v1651_v56  ;;  %v549_v20 = vpop.f32.mrb[15].mxu0  ;;  %v629_v21 = vpop.f32.mrb[15].mxu1 }
 0x16e   : > { %827 = vst [vmem:[%s1668_s21 + $0x60] sm:$0xff] %v795_v14  ;;  %843 = vst [vmem:[%s1668_s21 + $0xe0] sm:$0xff] %v811_v15  ;;  %v758_v22 = vmul.f32 %v1651_v56, %v549_v20  ;;  %v774_v23 = vmul.f32 %v1651_v56, %v629_v21 }
 0x16f   : > { %v798_v24 = vadd.f32 %v1656_v58, %v759_v18  ;;  %v814_v25 = vadd.f32 %v1656_v58, %v775_v19 }
 0x170   : > { %v797_v26 = vadd.f32 %v1656_v58, %v758_v22  ;;  %v813_v27 = vadd.f32 %v1656_v58, %v774_v23 }
 0x171   : > { %830 = vst [vmem:[%s1668_s21 + $0x78] sm:$0xff] %v798_v24  ;;  %846 = vst [vmem:[%s1668_s21 + $0xf8] sm:$0xff] %v814_v25 }
 0x172   : > { %829 = vst [vmem:[%s1668_s21 + $0x70] sm:$0xff] %v797_v26  ;;  %845 = vst [vmem:[%s1668_s21 + $0xf0] sm:$0xff] %v813_v27 }
 0x173   : > { %1335 = shalt.err (!%p1332_p5)
}
 0x174   : > { %s1336_s8 = scalar_lea.hbm %s1757_s29, 4096  ;;  %s1340_s27 = scalar_lea.hbm %s1818_s4, 8192 }
 0x175   : > { %p1337_p9 = scmp.ne.s32.totalorder %s1757_s29, %s1336_s8  ;;  %p1341_p3 = scmp.lt.u32.totalorder %s1757_s29, %s1818_s4 }
 0x176   : > { %p1342_p7 = scmp.lt.u32.totalorder %s1340_s27, %s1336_s8  ;;  %p1344_p4 = scmp.lt.u32.totalorder %s1336_s8, %s1757_s29 }
 0x177   : > { %p1338_p1 = pnand %p1337_p9, %p1541_p10 }
 0x178   : > { %p1343_p13 = por %p1342_p7, %p1341_p3 }
 0x179   : > { %p1339_p2 = pneg %p1338_p1 }
 0x17a   : > { %p1345_p6 = por %p1344_p4, %p1343_p13 }
 0x17c   : > { %p1346_p8 = pnand %p1345_p6, %p1339_p2 }
 0x17e   : > { %1349 = shalt.err (!%p1346_p8)
}
 0x17f   : > { %s1415_s22 = smov 128   ;;  %s1416_s18 = smov 8  }
 0x180   : > { %1193 = dma.vmem_to_hbm [thread:$0]  (%p1541_p10), %s1759_s28, 4096, %s1757_s29, %s848_s9, %s1415_s22, %s1415_s22, %s1416_s18  }
 0x181 PF: > { %s877_s6 = sand.u32 1, %s1388_s15   ;;  %p1836_p12 = scmp.ne.s32.totalorder %s1826_s26, 0 }
 0x182   : > { %p1837_p11 = scmp.ge.s32.totalorder %s1408_s20, 2  ;;  %s878_s11 = scalar_lea.sflag [#allocation5], %s877_s6 }
 0x184   : > { %p1204_p0 = pnand %p1837_p11, %p1836_p12 }
 0x186   : > { %1383 = dma.done.wait (!%p1204_p0), %s878_s11, 4096  }
 0x187   : > { %1385 = vsyncadd (!%p1204_p0), %s878_s11, 4294963200  ;;  %s21_s20 = sadd.s32 1, %s1408_s20   ;;  %s1838_s15 = smov %s1392_s16 }
 0x188   : > { %p18_p5 = scmp.ge.s32.totalorder %s21_s20, 4   ;;  %s1839_s16 = smov %s1396_s17 }
 0x189   : > { %s1840_s17 = smov %s1550_s10  ;;  %s1841_s18 = smov %s1404_s19 }
 0x18a   : > { %s1842_s19 = smov %s1844_s5  ;;  %20 = sbr.rel (!%p18_p5) target bundleno = 7 (0x7), region = 100 }
 0x191   :  { %883 = vsyncpa [#allocation4], 1 }
 0x192   :  { %885 = vsyncpa [#allocation4 + $0x1], 1 }
 0x193   :  { %886 = vsyncpa [#allocation7], 1 }
 0x194   :  { %887 = vsyncpa [#allocation5], 1 }
 0x195   :  { %889 = vsyncpa [#allocation5 + $0x1], 1 }

</bundles_post_ra>
